<compile_context>
chip_gen: v7x
topology: tpu7x:2x2x1
jax: 0.10.0
libtpu: 0.0.40
codegen_flags: <defaults>
</compile_context>

<pallas_src>
import math

import jax
import jax.numpy as jnp
from jax.experimental import pallas as pl
from jax.experimental.pallas import tpu as pltpu

LANE = 128                       # vreg lane width (fast axis)
SMALL_BYTES = 4 * 1024 * 1024    # single-block threshold for unaligned inputs


def _flatten_copy_kernel(x_ref, o_ref):
    # Identity copy of the current tile — materializes the flattened buffer
    # with element order preserved (torch .view(-1) semantics).
    o_ref[...] = x_ref[...]


@jax.jit
def flatten(x):
    """Pallas equivalent of Flatten.forward: returns x flattened to 1-D."""
    total = math.prod(x.shape)
    if total == 0:
        return x.reshape(-1)

    itemsize = jnp.dtype(x.dtype).itemsize
    packing = max(4 // itemsize, 1)      # 1 for f32, 2 for bf16, 4 for int8/fp8
    sublane = 8 * packing                # min tileable second-minor extent

    flat = x.reshape(-1)                 # metadata-only for a contiguous array

    pad = (-total) % LANE
    if pad and total * itemsize <= SMALL_BYTES:
        # Unaligned but small: full-array block (legal since block == array
        # dims), zero pad/slice traffic.  In + out comfortably fit VMEM.
        x2d = flat.reshape(1, total)
        out2d = pl.pallas_call(
            _flatten_copy_kernel,
            out_shape=jax.ShapeDtypeStruct((1, total), x.dtype),
        )(x2d)
        return out2d.reshape(-1)

    if pad:
        # Rare fallback: large and not lane-aligned — pad so the data can be
        # presented as a lane-dense 2-D slab, slice the tail off afterwards.
        flat = jnp.pad(flat, (0, pad))

    rows = flat.shape[0] // LANE
    x2d = flat.reshape(rows, LANE)

    # Fixed ~2 MiB blocks (4096 rows for f32, 8192 for bf16, 16384 for int8).
    target_rows = (2 * 1024 * 1024) // (LANE * itemsize)
    assert target_rows % sublane == 0
    if rows <= target_rows:
        block_rows = rows                # full-dim block: always a legal tile
    else:
        block_rows = target_rows         # multiple of sublane; cdiv grid below
    grid = (pl.cdiv(rows, block_rows),)  # partial last block handled by Pallas

    out2d = pl.pallas_call(
        _flatten_copy_kernel,
        out_shape=jax.ShapeDtypeStruct((rows, LANE), x.dtype),
        grid_spec=pltpu.PrefetchScalarGridSpec(
            num_scalar_prefetch=0,
            grid=grid,
            in_specs=[pl.BlockSpec((block_rows, LANE), lambda i: (i, 0))],
            out_specs=pl.BlockSpec((block_rows, LANE), lambda i: (i, 0)),
        ),
        compiler_params=pltpu.CompilerParams(
            dimension_semantics=("parallel",),  # lets v7x shard across both TCs
        ),
    )(x2d)

    out = out2d.reshape(-1)
    if pad:
        out = out[:total]
    return out


if __name__ == "__main__":
    key = jax.random.PRNGKey(0)
    # Small NCHW input consistent with a conv/graph-pooling pipeline.
    x = jax.random.normal(key, (2, 4, 16, 16), dtype=jnp.float32)

    y = flatten(x)
    y = jax.block_until_ready(y)

    # Correctness check against the reference semantics of x.view(-1).
    ref = x.reshape(-1)
    assert y.shape == (2 * 4 * 16 * 16,), y.shape
    assert y.dtype == x.dtype
    assert bool(jnp.all(y == ref)), "flatten output mismatch"

    # Also exercise the unaligned-small single-block path.
    x_odd = jax.random.normal(key, (3, 5, 7), dtype=jnp.float32)
    y_odd = jax.block_until_ready(flatten(x_odd))
    assert y_odd.shape == (105,), y_odd.shape
    assert bool(jnp.all(y_odd == x_odd.reshape(-1))), "unaligned flatten mismatch"

    print("KERNEL_OK")
</pallas_src>

<mosaic_0001>
module attributes {stable_mosaic.version = 11 : i64} {
  func.func @_flatten_copy_kernel(%arg0: i32, %arg1: memref<16x128xf32, #tpu.memory_space<vmem>>, %arg2: memref<16x128xf32, #tpu.memory_space<vmem>>) attributes {dimension_semantics = [#tpu.dimension_semantics<parallel>], iteration_bounds = array<i64: 1>, scalar_prefetch = 0 : i64, scratch_operands = 0 : i64, tpu.core_type = #tpu.core_type<tc>, window_params = [{transform_indices = @transform_0, window_bounds = array<i64: 16, 128>}, {transform_indices = @transform_1, window_bounds = array<i64: 16, 128>}]} {
    %c0 = arith.constant 0 : index
    %c0_0 = arith.constant 0 : index
    %0 = vector.load %arg1[%c0, %c0_0] : memref<16x128xf32, #tpu.memory_space<vmem>>, vector<16x128xf32>
    %c0_1 = arith.constant 0 : index
    %c0_2 = arith.constant 0 : index
    %1 = vector.load %arg2[%c0_1, %c0_2] : memref<16x128xf32, #tpu.memory_space<vmem>>, vector<16x128xf32>
    tpu.vector_store %arg2[%c0_1, %c0_2], %0 {strides = array<i32>} : memref<16x128xf32, #tpu.memory_space<vmem>>, vector<16x128xf32>,
    return
  }
  func.func @transform_0(%arg0: i32) -> (i32, i32) {
    %c0_i32 = arith.constant 0 : i32
    %c0_i32_0 = arith.constant 0 : i32
    return %arg0, %c0_i32 : i32, i32
  }
  func.func @transform_1(%arg0: i32) -> (i32, i32) {
    %c0_i32 = arith.constant 0 : i32
    %c0_i32_0 = arith.constant 0 : i32
    return %arg0, %c0_i32 : i32, i32
  }
}

</mosaic_0001>

<bundles_post_ra>
// kernel: flatten.1
= control target key start
LH: loop header
LB: loop body
LE: loop exit
PB: predicated region body
PF: predicated region fallthrough
CT: control target
= control target key end

     0   :  { %s87_s0 = inlined_call_operand.vmem [shape: f32[16,128], index: 0, kind: input, shape index: {}]   ;;  %s88_s1 = inlined_call_operand.hbm [shape: f32[16,128], index: 1, kind: output, shape index: {}]  }
   0x1   :  { %v9_v0 = vld [vmem:[%s87_s0] sm:$0xff]  ;;  %v10_v1 = vld [vmem:[%s87_s0 + $0x8] sm:$0xff] }
   0x2   :  { %6 = vsyncpa [#allocation3], 0  ;;  %11 = vst [vmem:[#allocation2] sm:$0xff] %v9_v0  ;;  %s56_s10 = smov [#allocation2]  }
   0x3   :  { %12 = vst [vmem:[#allocation2 + $0x8] sm:$0xff] %v10_v1  ;;  %s18_s11 = sshll.u32 %s56_s10, 4  ;;  %s19_s11 = int_to_ptr.vmem [resolvable:$true] %s18_s11 }
   0x4   :  { %s32_s12 = scalar_lea.vmem %s19_s11, 256  ;;  %p37_p1 = scmp.lt.s32.totalorder %s19_s11, %s19_s11 }
   0x5   :  { %p33_p0 = scmp.ne.s32.totalorder %s19_s11, %s32_s12  ;;  %p38_p2 = scmp.lt.s32.totalorder %s32_s12, %s32_s12 }
   0x7   :  { %p39_p3 = por %p38_p2, %p37_p1 }
   0x9   :  { %p40_p4 = pnand %p39_p3, %p33_p0 }
   0xb   :  { %43 = shalt.err (!%p40_p4)
}
   0xc   :  { %s44_s15 = scalar_lea.hbm %s88_s1, 256 }
   0xd   :  { %p45_p5 = scmp.ne.s32.totalorder %s88_s1, %s44_s15  ;;  %p48_p6 = scmp.lt.u32.totalorder %s44_s15, %s88_s1 }
   0xf   :  { %p50_p7 = pnand %p48_p6, %p45_p5 }
  0x11   :  { %53 = shalt.err (!%p50_p7)
}
  0x12   :  { %s57_s19 = smov 128   ;;  %s58_s20 = smov 8  }
  0x13   :  { %24 = dma.vmem_to_hbm [thread:$0]  %s19_s11, 256, %s88_s1, [#allocation3], %s57_s19, %s57_s19, %s58_s20  }
  0x14   :  { %54 = dma.done.wait [#allocation3], 256  }
  0x15   :  { %55 = vsyncadd [#allocation3], 4294967040 }
  0x16   :  { %28 = vsyncpa [#allocation3], 1 }

</bundles_post_ra>
